<compile_context>
chip_gen: v7x
topology: tpu7x:2x2x1
jax: 0.10.0
libtpu: 0.0.40
codegen_flags: <defaults>
</compile_context>

<pallas_src>
import numpy as np

import jax
import jax.numpy as jnp
from jax.experimental import pallas as pl
from jax.experimental.pallas import tpu as pltpu


KH = KW = 3
STRIDE = 2
_SLAB_W = 128            # lane width of the packed weight slab (lane-dense)
_ROW_ALIGN = 16          # bf16 packs 16 sublanes per vreg -> align slab rows


def _conv_out(n):
    return (n - KH) // STRIDE + 1


def _round_rows(n):
    return ((n + _ROW_ALIGN - 1) // _ROW_ALIGN) * _ROW_ALIGN


# ----------------------------------------------------------------------------
# Fused whole-network kernel (built as a closure over the static slab layout).
# ----------------------------------------------------------------------------
def _make_fused_kernel(layout, dims):
    B, P1, C1 = dims["B"], dims["P1"], dims["C1"]
    R1, R2, C2 = dims["R1"], dims["R2"], dims["C2"]
    TAPS, NSP, HID, OUT = dims["TAPS"], dims["NSP"], dims["HID"], dims["OUT"]

    oW1, oS2, oW2 = layout["W1"], layout["S2"], layout["W2"]
    oWf1, oWf2 = layout["Wf1"], layout["Wf2"]
    oF = [layout["F%d" % s] for s in range(NSP)]

    f32 = jnp.float32
    bf16 = jnp.bfloat16

    def kernel(p_ref, w_ref, b_ref, o_ref):
        # ---- conv1: one GEMM + bias + ReLU.  rows=(b,h1,w1), cols=cout1.
        w1 = w_ref[oW1:oW1 + P1, 0:C1]                               # (27,16) bf16
        y1 = jnp.dot(p_ref[...], w1, preferred_element_type=f32)     # (50,16) f32
        y1 = jnp.maximum(y1 + b_ref[0:1, 0:C1], 0.0).astype(bf16)

        # ---- conv2 patch gather: ONE stacked 0/1-selection GEMM.
        s2 = w_ref[oS2:oS2 + TAPS * R2, 0:R1]                        # (72,50) bf16
        g = jnp.dot(s2, y1, preferred_element_type=f32).astype(bf16)  # (72,16)

        # ---- conv2 taps: 9 dots on 8/16-aligned sublane slices, f32 accumulate.
        acc2 = jnp.zeros((R2, C2), f32)
        for k in range(TAPS):
            gk = g[k * R2:(k + 1) * R2, :]                           # (8,16)
            w2k = w_ref[oW2 + k * C1:oW2 + (k + 1) * C1, 0:C2]       # (16,32)
            acc2 = acc2 + jnp.dot(gk, w2k, preferred_element_type=f32)
        y2 = jnp.maximum(acc2 + b_ref[1:2, 0:C2], 0.0).astype(bf16)  # (8,32)

        # ---- fc1: one exactly-128-lane GEMM, then 4 selection dots that
        # realize PyTorch's channel-major .view(-1, 128) flatten.
        wf1 = w_ref[oWf1:oWf1 + C2, 0:NSP * HID]                     # (32,128)
        zf = jnp.dot(y2, wf1, preferred_element_type=f32).astype(bf16)  # (8,128)
        acc3 = jnp.zeros((B, HID), f32)
        for s in range(NSP):
            fs = w_ref[oF[s]:oF[s] + B, 0:R2]                        # (2,8)
            acc3 = acc3 + jnp.dot(fs, zf[:, s * HID:(s + 1) * HID],
                                  preferred_element_type=f32)
        h = jnp.maximum(acc3 + b_ref[2:3, 0:HID], 0.0).astype(bf16)  # (2,hidden)

        # ---- fc2 (only HBM store of the whole network).
        wf2 = w_ref[oWf2:oWf2 + HID, 0:OUT]                          # (32,4)
        out = jnp.dot(h, wf2, preferred_element_type=f32) + b_ref[3:4, 0:OUT]
        o_ref[...] = out.astype(o_ref.dtype)

    return kernel


# ----------------------------------------------------------------------------
# One-time parameter prep: fold layouts/permutations into the weights and pack
# everything into ONE bf16 weight slab + ONE f32 bias slab (host-side work).
# ----------------------------------------------------------------------------
def prepare_fused_params(params, batch, in_hw=12):
    B = batch
    c1 = params["conv1_w"].shape[0]                     # 16
    cin = params["conv1_w"].shape[1]                    # 3
    c2 = params["conv2_w"].shape[0]                     # 32
    hid = params["fc1_w"].shape[0]
    out = params["fc2_w"].shape[0]
    oh1 = ow1 = _conv_out(in_hw)                        # 5
    oh2 = ow2 = _conv_out(oh1)                          # 2
    nsp = oh2 * ow2                                     # 4
    r1 = B * oh1 * ow1                                  # 50
    r2 = B * nsp                                        # 8
    p1 = KH * KW * cin                                  # 27
    taps = KH * KW
    assert c2 * nsp == params["fc1_w"].shape[1] == 128
    assert max(r1, nsp * hid, hid, out) <= _SLAB_W

    w = {k: np.asarray(v, np.float32) for k, v in params.items()}

    # conv1 weight (Cout,Cin,KH,KW) -> (KH*KW*Cin, Cout); row order = (i,j,ci)
    W1 = w["conv1_w"].transpose(2, 3, 1, 0).reshape(p1, c1)

    # conv2 stacked patch-gather selection: S2[k*r2 + p, q] = 1 picks the y1
    # row feeding conv2 output row p at kernel tap k.  (O(B^2) — fine at B=2.)
    S2 = np.zeros((taps * r2, r1), np.float32)
    for k in range(taps):
        i, j = divmod(k, KW)
        for b in range(B):
            for oh in range(oh2):
                for ow in range(ow2):
                    p = (b * oh2 + oh) * ow2 + ow
                    q = (b * oh1 + STRIDE * oh + i) * ow1 + (STRIDE * ow + j)
                    S2[k * r2 + p, q] = 1.0

    # conv2 weight stacked per tap: row = (k, ci), col = cout2
    W2 = w["conv2_w"].transpose(2, 3, 1, 0).reshape(taps * c1, c2)

    # fc1 weight with channel-major flatten folded in, 128 lanes wide:
    # Wf1wide[ci2, s*hid + u] = fc1_w[u, ci2*nsp + s]
    Wf1 = w["fc1_w"].reshape(hid, c2, nsp).transpose(1, 2, 0).reshape(c2, nsp * hid)

    # flatten selection per spatial block s: F_s[b, p] = 1 iff p == b*nsp + s
    Fs = []
    for s in range(nsp):
        f = np.zeros((B, r2), np.float32)
        for b in range(B):
            f[b, b * nsp + s] = 1.0
        Fs.append(f)

    Wf2 = w["fc2_w"].T                                   # (hid, out)

    # ---- pack all matmul operands into ONE bf16 slab (static aligned rows)
    layout, blocks, off = {}, [], 0

    def add(name, mat):
        nonlocal off
        r, c = mat.shape
        blk = np.zeros((_round_rows(r), _SLAB_W), np.float32)
        blk[:r, :c] = mat
        layout[name] = off
        blocks.append(blk)
        off += blk.shape[0]

    add("W1", W1)
    add("S2", S2)
    add("W2", W2)
    add("Wf1", Wf1)
    for s in range(nsp):
        add("F%d" % s, Fs[s])
    add("Wf2", Wf2)
    wslab = jnp.asarray(np.concatenate(blocks, axis=0), jnp.bfloat16)

    # ---- ONE small f32 bias slab (bias/ReLU math stays f32 in-kernel)
    bslab_np = np.zeros((8, _SLAB_W), np.float32)
    bslab_np[0, :c1] = w["conv1_b"]
    bslab_np[1, :c2] = w["conv2_b"]
    bslab_np[2, :hid] = w["fc1_b"]
    bslab_np[3, :out] = w["fc2_b"]
    bslab = jnp.asarray(bslab_np)

    dims = dict(B=B, IN_HW=in_hw, CIN=cin, OH1=oh1, OW1=ow1, P1=p1, C1=c1,
                R1=r1, R2=r2, C2=c2, TAPS=taps, NSP=nsp, HID=hid, OUT=out)
    return dict(wslab=wslab, bslab=bslab, layout=layout, dims=dims)


# ----------------------------------------------------------------------------
# Forward builder: tiny conv1 im2col (marked fusible into the pallas_call
# input) feeding ONE fused Pallas kernel.
# ----------------------------------------------------------------------------
def make_forward(params, batch, in_hw=12):
    prep = prepare_fused_params(params, batch, in_hw)
    wslab, bslab = prep["wslab"], prep["bslab"]
    dims = prep["dims"]
    kernel = _make_fused_kernel(prep["layout"], dims)

    B, OUT = dims["B"], dims["OUT"]
    oh1, ow1, cin, hw = dims["OH1"], dims["OW1"], dims["CIN"], dims["IN_HW"]

    flops = 2 * (dims["R1"] * dims["P1"] * dims["C1"]
                 + dims["TAPS"] * dims["R2"] * dims["R1"] * dims["C1"]
                 + dims["TAPS"] * dims["R2"] * dims["C1"] * dims["C2"]
                 + dims["R2"] * dims["C2"] * dims["NSP"] * dims["HID"]
                 + dims["NSP"] * B * dims["R2"] * dims["HID"]
                 + B * dims["HID"] * OUT)
    bytes_accessed = (dims["R1"] * dims["P1"] * 2 + wslab.size * 2
                      + bslab.size * 4 + B * OUT * 4)

    @jax.jit
    def forward(x):
        assert x.shape == (B, cin, hw, hw), "batch/shape baked in at prep time"
        # conv1 im2col on the raw ~3.5 KB input; feature order = (kh, kw, cin)
        # matches W1's row order.  allow_input_fusion lets XLA fold this
        # producer into the pallas_call input instead of a separate launch.
        x_nhwc = jnp.transpose(x, (0, 2, 3, 1))
        cols = [x_nhwc[:, i:i + STRIDE * oh1:STRIDE, j:j + STRIDE * ow1:STRIDE, :]
                for i in range(KH) for j in range(KW)]
        patches = jnp.concatenate(cols, axis=-1).reshape(
            B * oh1 * ow1, cin * KH * KW).astype(jnp.bfloat16)

        return pl.pallas_call(
            kernel,
            out_shape=jax.ShapeDtypeStruct((B, OUT), jnp.float32),
            in_specs=[pl.BlockSpec(memory_space=pltpu.MemorySpace.VMEM)] * 3,
            out_specs=pl.BlockSpec(memory_space=pltpu.MemorySpace.VMEM),
            compiler_params=pltpu.CompilerParams(
                allow_input_fusion=[True, False, False]),
            cost_estimate=pl.CostEstimate(
                flops=flops, transcendentals=0, bytes_accessed=bytes_accessed),
        )(patches, wslab, bslab)

    return forward


# ----------------------------------------------------------------------------
# PyTorch-style parameter init (same shapes / init ranges as nn.Conv2d/Linear).
# ----------------------------------------------------------------------------
def init_params(key, hidden_size, output_size):
    ks = jax.random.split(key, 8)

    def unif(k, shape, fan_in):
        bound = 1.0 / jnp.sqrt(fan_in)
        return jax.random.uniform(k, shape, jnp.float32, -bound, bound)

    return {
        "conv1_w": unif(ks[0], (16, 3, 3, 3), 3 * 3 * 3),
        "conv1_b": unif(ks[1], (16,), 3 * 3 * 3),
        "conv2_w": unif(ks[2], (32, 16, 3, 3), 16 * 3 * 3),
        "conv2_b": unif(ks[3], (32,), 16 * 3 * 3),
        "fc1_w": unif(ks[4], (hidden_size, 128), 128),
        "fc1_b": unif(ks[5], (hidden_size,), 128),
        "fc2_w": unif(ks[6], (output_size, hidden_size), hidden_size),
        "fc2_b": unif(ks[7], (output_size,), hidden_size),
    }


# Pure-JAX reference (independent path via lax.conv) used only for validation.
def reference_forward(params, x):
    hi = jax.lax.Precision.HIGHEST
    y = jax.lax.conv_general_dilated(
        x, params["conv1_w"], window_strides=(STRIDE, STRIDE), padding="VALID",
        dimension_numbers=("NCHW", "OIHW", "NCHW"), precision=hi)
    y = jnp.maximum(y + params["conv1_b"][None, :, None, None], 0.0)
    y = jax.lax.conv_general_dilated(
        y, params["conv2_w"], window_strides=(STRIDE, STRIDE), padding="VALID",
        dimension_numbers=("NCHW", "OIHW", "NCHW"), precision=hi)
    y = jnp.maximum(y + params["conv2_b"][None, :, None, None], 0.0)
    y = y.reshape(y.shape[0], -1)                    # channel-major = view(-1,128)
    y = jnp.maximum(jnp.dot(y, params["fc1_w"].T, precision=hi)
                    + params["fc1_b"], 0.0)
    return jnp.dot(y, params["fc2_w"].T, precision=hi) + params["fc2_b"]


if __name__ == "__main__":
    hidden_size = 32
    output_size = 4
    batch = 2

    key = jax.random.PRNGKey(0)
    k_params, k_x = jax.random.split(key)
    params = init_params(k_params, hidden_size, output_size)

    # 12x12 input -> conv1 5x5 -> conv2 2x2 -> 32*2*2 = 128, matching fc1.
    x = jax.random.normal(k_x, (batch, 3, 12, 12), jnp.float32)

    forward = make_forward(params, batch, in_hw=12)
    out = jax.block_until_ready(forward(x))
    assert out.shape == (batch, output_size)

    ref = jax.block_until_ready(jax.jit(reference_forward)(params, x))
    max_err = float(jnp.max(jnp.abs(out - ref)))
    if not (bool(jnp.all(jnp.isfinite(out))) and max_err < 5e-2):
        raise SystemExit(f"numerical mismatch vs reference: max |err| = {max_err}")
    print("KERNEL_OK")
</pallas_src>

<mosaic_0001>
module attributes {stable_mosaic.version = 11 : i64} {
  func.func @kernel(%arg0: memref<50x27xbf16, #tpu.memory_space<vmem>>, %arg1: memref<384x128xbf16, #tpu.memory_space<vmem>>, %arg2: memref<8x128xf32, #tpu.memory_space<vmem>>, %arg3: memref<2x4xf32, #tpu.memory_space<vmem>>) attributes {dimension_semantics = [], scalar_prefetch = 0 : i64, scratch_operands = 0 : i64, tpu.core_type = #tpu.core_type<tc>} {
    %c0 = arith.constant 0 : index
    %c0_0 = arith.constant 0 : index
    %0 = vector.load %arg1[%c0, %c0_0] : memref<384x128xbf16, #tpu.memory_space<vmem>>, vector<27x16xbf16>
    %c0_1 = arith.constant 0 : index
    %c0_2 = arith.constant 0 : index
    %1 = vector.load %arg0[%c0_1, %c0_2] : memref<50x27xbf16, #tpu.memory_space<vmem>>, vector<50x27xbf16>
    %cst = arith.constant dense<0.000000e+00> : vector<50x16xf32>
    %2 = tpu.matmul %1, %0, %cst {dimension_numbers = #tpu.dot_dimension_numbers<[1], [0], [0], [1], [0, 0, 1, 1], [], []>} : vector<50x27xbf16>, vector<27x16xbf16>, vector<50x16xf32> -> vector<50x16xf32>
    %c0_3 = arith.constant 0 : index
    %c0_4 = arith.constant 0 : index
    %3 = vector.load %arg2[%c0_3, %c0_4] : memref<8x128xf32, #tpu.memory_space<vmem>>, vector<1x16xf32>
    %4 = vector.broadcast %3 : vector<1x16xf32> to vector<50x16xf32>
    %5 = arith.addf %2, %4 : vector<50x16xf32>
    %cst_5 = arith.constant 0.000000e+00 : f32
    %6 = vector.broadcast %cst_5 : f32 to vector<50x16xf32>
    %7 = arith.maximumf %5, %6 : vector<50x16xf32>
    %8 = arith.truncf %7 : vector<50x16xf32> to vector<50x16xbf16>
    %c32 = arith.constant 32 : index
    %c0_6 = arith.constant 0 : index
    %9 = vector.load %arg1[%c32, %c0_6] : memref<384x128xbf16, #tpu.memory_space<vmem>>, vector<72x50xbf16>
    %cst_7 = arith.constant dense<0.000000e+00> : vector<72x16xf32>
    %10 = tpu.matmul %9, %8, %cst_7 {dimension_numbers = #tpu.dot_dimension_numbers<[1], [0], [0], [1], [0, 0, 1, 1], [], []>} : vector<72x50xbf16>, vector<50x16xbf16>, vector<72x16xf32> -> vector<72x16xf32>
    %11 = arith.truncf %10 : vector<72x16xf32> to vector<72x16xbf16>
    %cst_8 = arith.constant 0.000000e+00 : f32
    %12 = vector.broadcast %cst_8 : f32 to vector<8x32xf32>
    %13 = vector.extract_strided_slice %11 {offsets = [0, 0], sizes = [8, 16], strides = [1, 1]} : vector<72x16xbf16> to vector<8x16xbf16>
    %c112 = arith.constant 112 : index
    %c0_9 = arith.constant 0 : index
    %14 = vector.load %arg1[%c112, %c0_9] : memref<384x128xbf16, #tpu.memory_space<vmem>>, vector<16x32xbf16>
    %cst_10 = arith.constant dense<0.000000e+00> : vector<8x32xf32>
    %15 = tpu.matmul %13, %14, %cst_10 {dimension_numbers = #tpu.dot_dimension_numbers<[1], [0], [0], [1], [0, 0, 1, 1], [], []>} : vector<8x16xbf16>, vector<16x32xbf16>, vector<8x32xf32> -> vector<8x32xf32>
    %16 = arith.addf %12, %15 : vector<8x32xf32>
    %17 = vector.extract_strided_slice %11 {offsets = [8, 0], sizes = [8, 16], strides = [1, 1]} : vector<72x16xbf16> to vector<8x16xbf16>
    %c128 = arith.constant 128 : index
    %c0_11 = arith.constant 0 : index
    %18 = vector.load %arg1[%c128, %c0_11] : memref<384x128xbf16, #tpu.memory_space<vmem>>, vector<16x32xbf16>
    %cst_12 = arith.constant dense<0.000000e+00> : vector<8x32xf32>
    %19 = tpu.matmul %17, %18, %cst_12 {dimension_numbers = #tpu.dot_dimension_numbers<[1], [0], [0], [1], [0, 0, 1, 1], [], []>} : vector<8x16xbf16>, vector<16x32xbf16>, vector<8x32xf32> -> vector<8x32xf32>
    %20 = arith.addf %16, %19 : vector<8x32xf32>
    %21 = vector.extract_strided_slice %11 {offsets = [16, 0], sizes = [8, 16], strides = [1, 1]} : vector<72x16xbf16> to vector<8x16xbf16>
    %c144 = arith.constant 144 : index
    %c0_13 = arith.constant 0 : index
    %22 = vector.load %arg1[%c144, %c0_13] : memref<384x128xbf16, #tpu.memory_space<vmem>>, vector<16x32xbf16>
    %cst_14 = arith.constant dense<0.000000e+00> : vector<8x32xf32>
    %23 = tpu.matmul %21, %22, %cst_14 {dimension_numbers = #tpu.dot_dimension_numbers<[1], [0], [0], [1], [0, 0, 1, 1], [], []>} : vector<8x16xbf16>, vector<16x32xbf16>, vector<8x32xf32> -> vector<8x32xf32>
    %24 = arith.addf %20, %23 : vector<8x32xf32>
    %25 = vector.extract_strided_slice %11 {offsets = [24, 0], sizes = [8, 16], strides = [1, 1]} : vector<72x16xbf16> to vector<8x16xbf16>
    %c160 = arith.constant 160 : index
    %c0_15 = arith.constant 0 : index
    %26 = vector.load %arg1[%c160, %c0_15] : memref<384x128xbf16, #tpu.memory_space<vmem>>, vector<16x32xbf16>
    %cst_16 = arith.constant dense<0.000000e+00> : vector<8x32xf32>
    %27 = tpu.matmul %25, %26, %cst_16 {dimension_numbers = #tpu.dot_dimension_numbers<[1], [0], [0], [1], [0, 0, 1, 1], [], []>} : vector<8x16xbf16>, vector<16x32xbf16>, vector<8x32xf32> -> vector<8x32xf32>
    %28 = arith.addf %24, %27 : vector<8x32xf32>
    %29 = vector.extract_strided_slice %11 {offsets = [32, 0], sizes = [8, 16], strides = [1, 1]} : vector<72x16xbf16> to vector<8x16xbf16>
    %c176 = arith.constant 176 : index
    %c0_17 = arith.constant 0 : index
    %30 = vector.load %arg1[%c176, %c0_17] : memref<384x128xbf16, #tpu.memory_space<vmem>>, vector<16x32xbf16>
    %cst_18 = arith.constant dense<0.000000e+00> : vector<8x32xf32>
    %31 = tpu.matmul %29, %30, %cst_18 {dimension_numbers = #tpu.dot_dimension_numbers<[1], [0], [0], [1], [0, 0, 1, 1], [], []>} : vector<8x16xbf16>, vector<16x32xbf16>, vector<8x32xf32> -> vector<8x32xf32>
    %32 = arith.addf %28, %31 : vector<8x32xf32>
    %33 = vector.extract_strided_slice %11 {offsets = [40, 0], sizes = [8, 16], strides = [1, 1]} : vector<72x16xbf16> to vector<8x16xbf16>
    %c192 = arith.constant 192 : index
    %c0_19 = arith.constant 0 : index
    %34 = vector.load %arg1[%c192, %c0_19] : memref<384x128xbf16, #tpu.memory_space<vmem>>, vector<16x32xbf16>
    %cst_20 = arith.constant dense<0.000000e+00> : vector<8x32xf32>
    %35 = tpu.matmul %33, %34, %cst_20 {dimension_numbers = #tpu.dot_dimension_numbers<[1], [0], [0], [1], [0, 0, 1, 1], [], []>} : vector<8x16xbf16>, vector<16x32xbf16>, vector<8x32xf32> -> vector<8x32xf32>
    %36 = arith.addf %32, %35 : vector<8x32xf32>
    %37 = vector.extract_strided_slice %11 {offsets = [48, 0], sizes = [8, 16], strides = [1, 1]} : vector<72x16xbf16> to vector<8x16xbf16>
    %c208 = arith.constant 208 : index
    %c0_21 = arith.constant 0 : index
    %38 = vector.load %arg1[%c208, %c0_21] : memref<384x128xbf16, #tpu.memory_space<vmem>>, vector<16x32xbf16>
    %cst_22 = arith.constant dense<0.000000e+00> : vector<8x32xf32>
    %39 = tpu.matmul %37, %38, %cst_22 {dimension_numbers = #tpu.dot_dimension_numbers<[1], [0], [0], [1], [0, 0, 1, 1], [], []>} : vector<8x16xbf16>, vector<16x32xbf16>, vector<8x32xf32> -> vector<8x32xf32>
    %40 = arith.addf %36, %39 : vector<8x32xf32>
    %41 = vector.extract_strided_slice %11 {offsets = [56, 0], sizes = [8, 16], strides = [1, 1]} : vector<72x16xbf16> to vector<8x16xbf16>
    %c224 = arith.constant 224 : index
    %c0_23 = arith.constant 0 : index
    %42 = vector.load %arg1[%c224, %c0_23] : memref<384x128xbf16, #tpu.memory_space<vmem>>, vector<16x32xbf16>
    %cst_24 = arith.constant dense<0.000000e+00> : vector<8x32xf32>
    %43 = tpu.matmul %41, %42, %cst_24 {dimension_numbers = #tpu.dot_dimension_numbers<[1], [0], [0], [1], [0, 0, 1, 1], [], []>} : vector<8x16xbf16>, vector<16x32xbf16>, vector<8x32xf32> -> vector<8x32xf32>
    %44 = arith.addf %40, %43 : vector<8x32xf32>
    %45 = vector.extract_strided_slice %11 {offsets = [64, 0], sizes = [8, 16], strides = [1, 1]} : vector<72x16xbf16> to vector<8x16xbf16>
    %c240 = arith.constant 240 : index
    %c0_25 = arith.constant 0 : index
    %46 = vector.load %arg1[%c240, %c0_25] : memref<384x128xbf16, #tpu.memory_space<vmem>>, vector<16x32xbf16>
    %cst_26 = arith.constant dense<0.000000e+00> : vector<8x32xf32>
    %47 = tpu.matmul %45, %46, %cst_26 {dimension_numbers = #tpu.dot_dimension_numbers<[1], [0], [0], [1], [0, 0, 1, 1], [], []>} : vector<8x16xbf16>, vector<16x32xbf16>, vector<8x32xf32> -> vector<8x32xf32>
    %48 = arith.addf %44, %47 : vector<8x32xf32>
    %c1 = arith.constant 1 : index
    %c0_27 = arith.constant 0 : index
    %49 = vector.load %arg2[%c1, %c0_27] : memref<8x128xf32, #tpu.memory_space<vmem>>, vector<1x32xf32>
    %50 = vector.broadcast %49 : vector<1x32xf32> to vector<8x32xf32>
    %51 = arith.addf %48, %50 : vector<8x32xf32>
    %cst_28 = arith.constant 0.000000e+00 : f32
    %52 = vector.broadcast %cst_28 : f32 to vector<8x32xf32>
    %53 = arith.maximumf %51, %52 : vector<8x32xf32>
    %54 = arith.truncf %53 : vector<8x32xf32> to vector<8x32xbf16>
    %c256 = arith.constant 256 : index
    %c0_29 = arith.constant 0 : index
    %55 = vector.load %arg1[%c256, %c0_29] : memref<384x128xbf16, #tpu.memory_space<vmem>>, vector<32x128xbf16>
    %cst_30 = arith.constant dense<0.000000e+00> : vector<8x128xf32>
    %56 = tpu.matmul %54, %55, %cst_30 {dimension_numbers = #tpu.dot_dimension_numbers<[1], [0], [0], [1], [0, 0, 1, 1], [], []>} : vector<8x32xbf16>, vector<32x128xbf16>, vector<8x128xf32> -> vector<8x128xf32>
    %57 = arith.truncf %56 : vector<8x128xf32> to vector<8x128xbf16>
    %cst_31 = arith.constant 0.000000e+00 : f32
    %58 = vector.broadcast %cst_31 : f32 to vector<2x32xf32>
    %c288 = arith.constant 288 : index
    %c0_32 = arith.constant 0 : index
    %59 = vector.load %arg1[%c288, %c0_32] : memref<384x128xbf16, #tpu.memory_space<vmem>>, vector<2x8xbf16>
    %60 = vector.extract_strided_slice %57 {offsets = [0, 0], sizes = [8, 32], strides = [1, 1]} : vector<8x128xbf16> to vector<8x32xbf16>
    %cst_33 = arith.constant dense<0.000000e+00> : vector<2x32xf32>
    %61 = tpu.matmul %59, %60, %cst_33 {dimension_numbers = #tpu.dot_dimension_numbers<[1], [0], [0], [1], [0, 0, 1, 1], [], []>} : vector<2x8xbf16>, vector<8x32xbf16>, vector<2x32xf32> -> vector<2x32xf32>
    %62 = arith.addf %58, %61 : vector<2x32xf32>
    %c304 = arith.constant 304 : index
    %c0_34 = arith.constant 0 : index
    %63 = vector.load %arg1[%c304, %c0_34] : memref<384x128xbf16, #tpu.memory_space<vmem>>, vector<2x8xbf16>
    %64 = vector.extract_strided_slice %57 {offsets = [0, 32], sizes = [8, 32], strides = [1, 1]} : vector<8x128xbf16> to vector<8x32xbf16>
    %cst_35 = arith.constant dense<0.000000e+00> : vector<2x32xf32>
    %65 = tpu.matmul %63, %64, %cst_35 {dimension_numbers = #tpu.dot_dimension_numbers<[1], [0], [0], [1], [0, 0, 1, 1], [], []>} : vector<2x8xbf16>, vector<8x32xbf16>, vector<2x32xf32> -> vector<2x32xf32>
    %66 = arith.addf %62, %65 : vector<2x32xf32>
    %c320 = arith.constant 320 : index
    %c0_36 = arith.constant 0 : index
    %67 = vector.load %arg1[%c320, %c0_36] : memref<384x128xbf16, #tpu.memory_space<vmem>>, vector<2x8xbf16>
    %68 = vector.extract_strided_slice %57 {offsets = [0, 64], sizes = [8, 32], strides = [1, 1]} : vector<8x128xbf16> to vector<8x32xbf16>
    %cst_37 = arith.constant dense<0.000000e+00> : vector<2x32xf32>
    %69 = tpu.matmul %67, %68, %cst_37 {dimension_numbers = #tpu.dot_dimension_numbers<[1], [0], [0], [1], [0, 0, 1, 1], [], []>} : vector<2x8xbf16>, vector<8x32xbf16>, vector<2x32xf32> -> vector<2x32xf32>
    %70 = arith.addf %66, %69 : vector<2x32xf32>
    %c336 = arith.constant 336 : index
    %c0_38 = arith.constant 0 : index
    %71 = vector.load %arg1[%c336, %c0_38] : memref<384x128xbf16, #tpu.memory_space<vmem>>, vector<2x8xbf16>
    %72 = vector.extract_strided_slice %57 {offsets = [0, 96], sizes = [8, 32], strides = [1, 1]} : vector<8x128xbf16> to vector<8x32xbf16>
    %cst_39 = arith.constant dense<0.000000e+00> : vector<2x32xf32>
    %73 = tpu.matmul %71, %72, %cst_39 {dimension_numbers = #tpu.dot_dimension_numbers<[1], [0], [0], [1], [0, 0, 1, 1], [], []>} : vector<2x8xbf16>, vector<8x32xbf16>, vector<2x32xf32> -> vector<2x32xf32>
    %74 = arith.addf %70, %73 : vector<2x32xf32>
    %c2 = arith.constant 2 : index
    %c0_40 = arith.constant 0 : index
    %75 = vector.load %arg2[%c2, %c0_40] : memref<8x128xf32, #tpu.memory_space<vmem>>, vector<1x32xf32>
    %76 = vector.broadcast %75 : vector<1x32xf32> to vector<2x32xf32>
    %77 = arith.addf %74, %76 : vector<2x32xf32>
    %cst_41 = arith.constant 0.000000e+00 : f32
    %78 = vector.broadcast %cst_41 : f32 to vector<2x32xf32>
    %79 = arith.maximumf %77, %78 : vector<2x32xf32>
    %80 = arith.truncf %79 : vector<2x32xf32> to vector<2x32xbf16>
    %c352 = arith.constant 352 : index
    %c0_42 = arith.constant 0 : index
    %81 = vector.load %arg1[%c352, %c0_42] : memref<384x128xbf16, #tpu.memory_space<vmem>>, vector<32x4xbf16>
    %cst_43 = arith.constant dense<0.000000e+00> : vector<2x4xf32>
    %82 = tpu.matmul %80, %81, %cst_43 {dimension_numbers = #tpu.dot_dimension_numbers<[1], [0], [0], [1], [0, 0, 1, 1], [], []>} : vector<2x32xbf16>, vector<32x4xbf16>, vector<2x4xf32> -> vector<2x4xf32>
    %c3 = arith.constant 3 : index
    %c0_44 = arith.constant 0 : index
    %83 = vector.load %arg2[%c3, %c0_44] : memref<8x128xf32, #tpu.memory_space<vmem>>, vector<1x4xf32>
    %84 = vector.broadcast %83 : vector<1x4xf32> to vector<2x4xf32>
    %85 = arith.addf %82, %84 : vector<2x4xf32>
    %c0_45 = arith.constant 0 : index
    %c0_46 = arith.constant 0 : index
    %86 = vector.load %arg3[%c0_45, %c0_46] : memref<2x4xf32, #tpu.memory_space<vmem>>, vector<2x4xf32>
    tpu.vector_store %arg3[%c0_45, %c0_46], %85 {strides = array<i32>} : memref<2x4xf32, #tpu.memory_space<vmem>>, vector<2x4xf32>,
    return
  }
}

</mosaic_0001>

<bundles_post_ra>
// kernel: forward.1
= control target key start
LH: loop header
LB: loop body
LE: loop exit
PB: predicated region body
PF: predicated region fallthrough
CT: control target
= control target key end

     0   :  { %vm74_vm0 = vcmask 1044480   ;;  %vm75_vm1 = vcmask 1045504   ;;  %v1404_v2 = vmov 65535   ;;  %vm61_vm2 = vcmask 220160   ;;  %s1619_s0 = inlined_call_operand.vmem [shape: bf16[50,27], index: 0, kind: input, shape index: {}]   ;;  %s1620_s1 = inlined_call_operand.vmem [shape: bf16[384,128], index: 1, kind: input, shape index: {}]   ;;  %s1621_s2 = inlined_call_operand.vmem [shape: f32[8,128], index: 2, kind: input, shape index: {}]   ;;  %s1622_s3 = inlined_call_operand.hbm [shape: f32[2,4], index: 3, kind: output, shape index: {}]  }
   0x1   :  { %v1356_v0 = vld [vmem:[%s1620_s1] sm:$0xff]   ;;  %v1357_v1 = vld [vmem:[%s1620_s1 + $0x8] sm:$0x3f]   ;;  %v76_v3 = vsel %vm74_vm0, 4294967295, %v1404_v2  ;;  %v1360_v8 = vld [vmem:[%s1619_s0 + $0x10] sm:$0xff]  }
   0x2   :  { %1215 = vmatprep.subr.bf16.mxu0 %v1356_v0  ;;  %v1358_v4 = vld [vmem:[%s1619_s0] sm:$0xff]   ;;  %v77_v5 = vsel %vm75_vm1, %v76_v3, 0  ;;  %v1359_v7 = vld [vmem:[%s1619_s0 + $0x8] sm:$0xff]   ;;  %v1361_v9 = vld [vmem:[%s1619_s0 + $0x18] ss:$0 sps:$4 sm:$0x11]  }
   0x3   :  { %1216 = vmatpush3.bf16.msra.mxu0 %v1356_v0  ;;  %v79_v6 = vand.u32 %v1357_v1, %v77_v5  ;;  %1219 = vmatprep.mubr.msk.bf16.mxu0 %vm61_vm2, %v1358_v4 }
   0x5   :  { %1217 = vmatprep.subr.bf16.mxu0 %v79_v6 }
   0x7   :  { %1218 = vmatpush3.bf16.msra.mxu0 %v79_v6 }
   0xa   :  { %1220 = vmatmul.mubr.msk.bf16.vlgmr.msra.gmra.mrb[0].mxu0 %vm61_vm2, %v1359_v7 }
   0xb   :  { %1223 = vmatprep.mubr.msk.bf16.mxu0 %vm61_vm2, %v1360_v8 }
   0xc   :  { %8 = vsyncpa [#allocation3], 0  ;;  %v1405_v10 = vmov 0.0   ;;  %vm1406_vm3 = vmmov 0   ;;  %v1367_v11 = vld [vmem:[%s1620_s1 + $0x40] sm:$0xff]   ;;  %vm204_vm4 = vcmask 1040384  }
   0xd   :  { %1227 = vmatprep.subr.bf16.mxu1 %v1405_v10  ;;  %1255 = vmatprep.subr.bf16.mxu0 %v1405_v10  ;;  %v1116_v12 = vld [vmem:[%s1621_s2] ss:$0 sm:$0xff]  ;;  %v1362_v40 = vld [vmem:[%s1620_s1 + $0x10] sm:$0xff]   ;;  %vm188_vm5 = vcmask 408576   ;;  %v1363_v41 = vld [vmem:[%s1620_s1 + $0x18] sm:$0xff]   ;;  %vm297_vm6 = vcmask 130048  }
   0xe   :  { %1235 = vmatprep.mubr.msk.bf16.mxu1 %vm1406_vm3, %v1405_v10  ;;  %1256 = vmatpush3.bf16.msra.mxu0 %v1367_v11  ;;  %v1364_v42 = vld [vmem:[%s1620_s1 + $0x20] sm:$0xff]   ;;  %v1365_v43 = vld [vmem:[%s1620_s1 + $0x28] sm:$0xff]   ;;  %v1366_v44 = vld [vmem:[%s1620_s1 + $0x30] ss:$0 sps:$4 sm:$0xff]   ;;  %vm784_vm7 = vcmask 261120   ;;  %vm838_vm8 = vcmask 1043456  }
   0xf   :  { %1261 = vmatprep.subr.bf16.mxu0 %v1405_v10  ;;  %v1368_v45 = vld [vmem:[%s1620_s1 + $0x60] sm:$0xff]   ;;  %v1369_v51 = vld [vmem:[%s1620_s1 + $0x38] sm:$0xff]   ;;  %v1370_v58 = vld [vmem:[%s1620_s1 + $0x48] sm:$0xff]   ;;  %s1407_s4 = smov 32   ;;  %s1408_s5 = smov 96   ;;  %vm834_vm9 = vcmask 64512  }
  0x10   :  { %v1371_v0 = vld [vmem:[%s1620_s1 + $0x50] sm:$0xff]   ;;  %v1372_v8 = vld [vmem:[%s1620_s1 + $0x58] sm:$0xff]   ;;  %s1409_s8 = smov 64   ;;  %s1410_s22 = smov [#allocation2]   ;;  %vm1100_vm10 = vcmask 25600  }
  0x11   :  { %v1373_v2 = vld [vmem:[%s1620_s1 + $0x70] sm:$0xff]   ;;  %s1108_s23 = sshll.u32 %s1410_s22, 4  ;;  %s1109_s23 = int_to_ptr.vmem [resolvable:$true] %s1108_s23 }
  0x12   :  { %1224 = vmatmul.mubr.msk.bf16.gmra.mrb[4].mxu0 %vm61_vm2, %v1361_v9  ;;  %s1380_s24 = scalar_lea.vmem %s1109_s23, 32  ;;  %p1385_p1 = scmp.lt.s32.totalorder %s1109_s23, %s1109_s23 }
  0x13   :  { %1257 = vmatprep.mubr.msk.bf16.mxu0 %vm1406_vm3, %v1405_v10  ;;  %p1381_p0 = scmp.ne.s32.totalorder %s1109_s23, %s1380_s24  ;;  %p1386_p2 = scmp.lt.s32.totalorder %s1380_s24, %s1380_s24 }
  0x15   :  { %p1387_p3 = por %p1386_p2, %p1385_p1 }
  0x17   :  { %p1388_p4 = pnand %p1387_p3, %p1381_p0 }
  0xdd   :  { %v1221_v13 = vpop.f32.mrb[0].mxu0 }
  0xde   :  { %v124_v14 = vadd.f32 %v1221_v13, %v1116_v12  ;;  %v115_v15 = vpop.f32.mrb[1].mxu0 }
  0xdf   :  { %v116_v16 = vadd.f32 %v1116_v12, %v115_v15  ;;  %v1222_v17 = vpop.f32.mrb[2].mxu0 }
  0xe0   :  { %v127_v18 = vadd.f32 %v1222_v17, %v1116_v12  ;;  %v118_v19 = vpop.f32.mrb[3].mxu0  ;;  %v147_v21 = vmax.f32 %v124_v14, 0.0  ;;  %v1375_v17 = vld [vmem:[%s1620_s1 + $0x78] sm:$0xff]  }
  0xe1   :  { %v119_v20 = vadd.f32 %v1116_v12, %v118_v19  ;;  %v145_v23 = vmax.f32 %v116_v16, 0.0  ;;  %v1374_v16 = vld [vmem:[%s1620_s1 + $0x68] sm:$0xff]   ;;  %v1376_v19 = vld [vmem:[%s1620_s1 + $0x80] sm:$0xff]  }
  0xe2   :  { %v148_v22 = vmax.f32 %v127_v18, 0.0 }
  0xe3   :  { %v146_v24 = vmax.f32 %v119_v20, 0.0  ;;  %v1377_v20 = vld [vmem:[%s1620_s1 + $0x88] sm:$0xff]  }
  0xe4   :  { %v153_v25 = vpack.c.bf16 %v148_v22, %v147_v21 }
  0xe5   :  { %v1225_v26 = vpop.f32.mrb[4].mxu0  ;;  %v152_v27 = vpack.c.bf16 %v146_v24, %v145_v23 }
  0xe6   :  { %v140_v28 = vadd.f32 %v1225_v26, %v1116_v12  ;;  %v131_v29 = vpop.f32.mrb[5].mxu0 }
  0xe7   :  { %v132_v30 = vadd.f32 %v1116_v12, %v131_v29  ;;  %v1226_v31 = vpop.f32.mrb[6].mxu0  ;;  %1228 = vmatpush3.bf16.msra.mxu1 %v152_v27 }
  0xe8   :  { %v134_v32 = vpop.f32.mrb[7].mxu0  ;;  %1229 = vmatprep.subr.bf16.mxu1 %v1405_v10  ;;  %v151_v34 = vmax.f32 %v140_v28, 0.0 }
  0xe9   :  { %v135_v33 = vadd.f32 %v1116_v12, %v134_v32  ;;  %v149_v35 = vmax.f32 %v132_v30, 0.0 }
  0xea   :  { %v155_v38 = vpack.c.bf16 %v151_v34, %v151_v34 }
  0xeb   :  { %v150_v36 = vmax.f32 %v135_v33, 0.0  ;;  %1230 = vmatpush3.bf16.msra.mxu1 %v153_v25 }
  0xec   :  { %1231 = vmatprep.subr.bf16.mxu1 %v1405_v10  ;;  %v206_v39 = vsel %vm204_vm4, %v155_v38, 0 }
  0xed   :  { %v154_v37 = vpack.c.bf16 %v150_v36, %v149_v35 }
  0xef   :  { %1232 = vmatpush3.bf16.msra.mxu1 %v154_v37 }
  0xf0   :  { %1233 = vmatprep.subr.bf16.mxu1 %v1405_v10 }
  0xf3   :  { %1234 = vmatpush3.bf16.msra.mxu1 %v206_v39 }
  0xf4   :  { %1285 = vmatprep.subr.bf16.mxu1 %v1405_v10 }
  0xf6   :  { %1236 = vmatmul.mubr.msk.bf16.vlgmr.msra.gmra.mrb[0].mxu1 %vm188_vm5, %v1362_v40 }
  0xf7   :  { %1239 = vmatprep.mubr.msk.bf16.mxu1 %vm1406_vm3, %v1405_v10  ;;  %1286 = vmatpush3.bf16.msra.mxu1 %v1368_v45 }
  0xf8   :  { %1297 = vmatprep.subr.bf16.mxu1 %v1405_v10 }
  0xfe   :  { %1240 = vmatmul.mubr.msk.bf16.gmra.mrb[4].mxu1 %vm188_vm5, %v1363_v41 }
  0xff   :  { %1243 = vmatprep.mubr.msk.bf16.mxu1 %vm1406_vm3, %v1405_v10 }
 0x106   :  { %1244 = vmatmul.mubr.msk.bf16.gmra.mrb[8].mxu1 %vm188_vm5, %v1364_v42 }
 0x107   :  { %1247 = vmatprep.mubr.msk.bf16.mxu1 %vm1406_vm3, %v1405_v10 }
 0x10e   :  { %1248 = vmatmul.mubr.msk.bf16.gmra.mrb[12].mxu1 %vm188_vm5, %v1365_v43 }
 0x10f   :  { %1251 = vmatprep.mubr.msk.bf16.mxu1 %vm1406_vm3, %v1405_v10 }
 0x116   :  { %1252 = vmatmul.mubr.msk.bf16.gmra.mrb[16].mxu1 %vm188_vm5, %v1366_v44 }
 0x117   :  { %1287 = vmatprep.mubr.msk.bf16.mxu1 %vm1406_vm3, %v1405_v10 }
 0x1c9   :  { %v242_v46 = vpop.f32.mrb[0].mxu1 }
 0x1ca   :  { %v1237_v47 = vpop.f32.mrb[1].mxu1 }
 0x1cb   :  { %v245_v48 = vpop.f32.mrb[2].mxu1 }
 0x1cc   :  { %v280_v49 = vpack.c.bf16 %v245_v48, %v242_v46  ;;  %v1238_v50 = vpop.f32.mrb[3].mxu1 }
 0x1ce   :  { %v290_v52 = vrot.slane %v280_v49, 4 }
 0x1d0   :  { %1258 = vmatmul.mubr.msk.bf16.vlgmr.msra.gmra.mrb[8].mxu0 %vm297_vm6, %v290_v52 }
 0x1d1   :  { %1262 = vmatpush3.bf16.msra.mxu0 %v1369_v51  ;;  %1263 = vmatprep.mubr.msk.bf16.mxu0 %vm1406_vm3, %v1405_v10  ;;  %v250_v53 = vpop.f32.mrb[4].mxu1 }
 0x1d2   :  { %v1241_v54 = vpop.f32.mrb[5].mxu1  ;;  %1267 = vmatprep.subr.bf16.mxu0 %v1405_v10 }
 0x1d3   :  { %v253_v55 = vpop.f32.mrb[6].mxu1 }
 0x1d4   :  { %v281_v56 = vpack.c.bf16 %v253_v55, %v250_v53  ;;  %v1242_v57 = vpop.f32.mrb[7].mxu1 }
 0x1d6   :  { %v445_v9 = vrot.slane %v281_v56, 4 }
 0x1d8   :  { %1264 = vmatmul.mubr.msk.bf16.vlgmr.msra.gmra.mrb[12].mxu0 %vm297_vm6, %v280_v49 }
 0x1d9   :  { %1268 = vmatpush3.bf16.msra.mxu0 %v1370_v58  ;;  %1269 = vmatprep.mubr.msk.bf16.mxu0 %vm1406_vm3, %v1405_v10  ;;  %v258_v59 = vpop.f32.mrb[8].mxu1 }
 0x1da   :  { %1273 = vmatprep.subr.bf16.mxu0 %v1405_v10  ;;  %v1245_v60 = vpop.f32.mrb[9].mxu1 }
 0x1db   :  { %v261_v61 = vpop.f32.mrb[10].mxu1 }
 0x1dc   :  { %v282_v62 = vpack.c.bf16 %v261_v61, %v258_v59  ;;  %v1246_v63 = vpop.f32.mrb[11].mxu1  ;;  %v1155_v61 = vld [vmem:[%s1621_s2 + $0x1] ss:$0 sm:$0xff] }
 0x1de   :  { %v551_v1 = vrot.slane %v282_v62, 4 }
 0x1e0   :  { %1270 = vmatmul.mubr.msk.bf16.vlgmr.msra.gmra.mrb[16].mxu0 %vm297_vm6, %v281_v56  ;;  %1288 = vmatmul.mubr.msk.bf16.vlgmr.msra.gmra.mrb[20].mxu1 %vm297_vm6, %v551_v1 }
 0x1e1   :  { %1274 = vmatpush3.bf16.msra.mxu0 %v1371_v0  ;;  %1275 = vmatprep.mubr.msk.bf16.mxu0 %vm1406_vm3, %v1405_v10  ;;  %v266_v3 = vpop.f32.mrb[12].mxu1 }
 0x1e2   :  { %1279 = vmatprep.subr.bf16.mxu0 %v1405_v10  ;;  %v1249_v4 = vpop.f32.mrb[13].mxu1  ;;  %1298 = vmatpush3.bf16.msra.mxu1 %v1373_v2 }
 0x1e3   :  { %v269_v5 = vpop.f32.mrb[14].mxu1  ;;  %1299 = vmatprep.mubr.msk.bf16.mxu1 %vm1406_vm3, %v1405_v10  ;;  %1309 = vmatprep.subr.bf16.mxu1 %v1405_v10 }
 0x1e4   :  { %v283_v6 = vpack.c.bf16 %v269_v5, %v266_v3  ;;  %v1250_v7 = vpop.f32.mrb[15].mxu1 }
 0x1e6   :  { %v657_v11 = vrot.slane %v283_v6, 4 }
 0x1e8   :  { %1276 = vmatmul.mubr.msk.bf16.vlgmr.msra.gmra.mrb[20].mxu0 %vm297_vm6, %v445_v9  ;;  %1300 = vmatmul.mubr.msk.bf16.vlgmr.msra.gmra.mrb[24].mxu1 %vm297_vm6, %v657_v11 }
 0x1e9   :  { %1280 = vmatpush3.bf16.msra.mxu0 %v1372_v8  ;;  %1281 = vmatprep.mubr.msk.bf16.mxu0 %vm1406_vm3, %v1405_v10  ;;  %v274_v12 = vpop.f32.mrb[16].mxu1 }
 0x1ea   :  { %1291 = vmatprep.subr.bf16.mxu0 %v1405_v10  ;;  %v1253_v13 = vpop.f32.mrb[17].mxu1  ;;  %1313 = vmatprep.mubr.msk.bf16.mxu1 %vm1406_vm3, %v1405_v10  ;;  %v284_v18 = vpack.c.bf16 %v274_v12, %v274_v12  ;;  %v829_v12 = vld [vmem:[%s1620_s1 + $0x90] sm:$0x1] }
 0x1eb   :  { %v277_v14 = vpop.f32.mrb[18].mxu1  ;;  %1310 = vmatpush3.bf16.msra.mxu1 %v1376_v19 }
 0x1ec   :  { %v1254_v15 = vpop.f32.mrb[19].mxu1  ;;  %1311 = vmatprep.subr.bf16.mxu1 %v1405_v10 }
 0x1ef   :  { %1312 = vmatpush3.bf16.msra.mxu1 %v1377_v20 }
 0x1f0   :  { %1282 = vmatmul.mubr.msk.bf16.vlgmr.msra.gmra.mrb[24].mxu0 %vm297_vm6, %v282_v62  ;;  %1323 = vmatprep.subr.bf16.mxu1 %v1405_v10 }
 0x1f1   :  { %1292 = vmatpush3.bf16.msra.mxu0 %v1374_v16  ;;  %1293 = vmatprep.mubr.msk.bf16.mxu0 %vm1406_vm3, %v1405_v10 }
 0x1f2   :  { %1303 = vmatprep.subr.bf16.mxu0 %v1405_v10 }
 0x1f8   :  { %1294 = vmatmul.mubr.msk.bf16.vlgmr.msra.gmra.mrb[28].mxu0 %vm297_vm6, %v283_v6 }
 0x1f9   :  { %1304 = vmatpush3.bf16.msra.mxu0 %v1375_v17  ;;  %1305 = vmatprep.mubr.msk.bf16.mxu0 %vm1406_vm3, %v1405_v10  ;;  %v830_v17 = vld [vmem:[%s1620_s1 + $0x98] sm:$0x1] }
 0x1fa   :  { %1317 = vmatprep.subr.bf16.mxu0 %v1405_v10 }
 0x200   :  { %1306 = vmatmul.mubr.msk.bf16.vlgmr.msra.gmra.mrb[32].mxu0 %vm297_vm6, %v284_v18  ;;  %v978_v18 = vld [vmem:[%s1620_s1 + $0xa8] sm:$0x1] }
 0x201   :  { %1319 = vmatprep.mubr.msk.bf16.mxu0 %vm1406_vm3, %v1405_v10 }
 0x2a3   :  { %v335_v21 = vpop.f32.mrb[8].mxu0 }
 0x2a4   :  { %v1259_v22 = vpop.f32.mrb[9].mxu0 }
 0x2a5   :  { %v338_v23 = vpop.f32.mrb[10].mxu0  ;;  %v1378_v22 = vld [vmem:[%s1620_s1 + $0xb0] sm:$0xff]  }
 0x2a6   :  { %v1260_v24 = vpop.f32.mrb[11].mxu0 }
 0x2ab   :  { %v384_v25 = vpop.f32.mrb[12].mxu0 }
 0x2ac   :  { %v385_v26 = vadd.f32 %v384_v25, %v335_v21  ;;  %v1265_v27 = vpop.f32.mrb[13].mxu0  ;;  %v928_v21 = vld [vmem:[%s1620_s1 + $0xa0] sm:$0x1]  ;;  %v1379_v25 = vld [vmem:[%s1620_s1 + $0xb8] sm:$0xff]  }
 0x2ad   :  { %v387_v28 = vpop.f32.mrb[14].mxu0 }
 0x2ae   :  { %v1266_v29 = vpop.f32.mrb[15].mxu0 }
 0x2b3   :  { %v435_v30 = vpop.f32.mrb[16].mxu0  ;;  %v595_v31 = vpop.f32.mrb[20].mxu1 }
 0x2b4   :  { %v441_v32 = vadd.f32 %v435_v30, %v385_v26  ;;  %v1271_v33 = vpop.f32.mrb[17].mxu0  ;;  %v1289_v34 = vpop.f32.mrb[21].mxu1 }
 0x2b5   :  { %v438_v35 = vpop.f32.mrb[18].mxu0  ;;  %v598_v36 = vpop.f32.mrb[22].mxu1 }
 0x2b6   :  { %v1272_v37 = vpop.f32.mrb[19].mxu0  ;;  %v1290_v38 = vpop.f32.mrb[23].mxu1 }
 0x2bb   :  { %v489_v39 = vpop.f32.mrb[20].mxu0  ;;  %v701_v40 = vpop.f32.mrb[24].mxu1 }
 0x2bc   :  { %v495_v41 = vadd.f32 %v489_v39, %v441_v32  ;;  %v1277_v42 = vpop.f32.mrb[21].mxu0  ;;  %v1301_v43 = vpop.f32.mrb[25].mxu1  ;;  %v1163_v39 = vld [vmem:[%s1621_s2 + $0x2] ss:$0 sm:$0xff] }
 0x2bd   :  { %v492_v44 = vpop.f32.mrb[22].mxu0  ;;  %v704_v45 = vpop.f32.mrb[26].mxu1 }
 0x2be   :  { %v1278_v46 = vpop.f32.mrb[23].mxu0  ;;  %v1302_v47 = vpop.f32.mrb[27].mxu1 }
 0x2bf   :  { %v1164_v46 = vld [vmem:[%s1621_s2 + $0x3] ss:$0 sm:$0xff] }
 0x2c3   :  { %v541_v48 = vpop.f32.mrb[24].mxu0 }
 0x2c4   :  { %v547_v49 = vadd.f32 %v541_v48, %v495_v41  ;;  %v1283_v50 = vpop.f32.mrb[25].mxu0 }
 0x2c5   :  { %v544_v51 = vpop.f32.mrb[26].mxu0 }
 0x2c6   :  { %v1284_v52 = vpop.f32.mrb[27].mxu0  ;;  %v601_v53 = vadd.f32 %v595_v31, %v547_v49 }
 0x2cb   :  { %v647_v54 = vpop.f32.mrb[28].mxu0 }
 0x2cc   :  { %v653_v55 = vadd.f32 %v647_v54, %v601_v53  ;;  %v1295_v56 = vpop.f32.mrb[29].mxu0 }
 0x2cd   :  { %v650_v57 = vpop.f32.mrb[30].mxu0 }
 0x2ce   :  { %v1296_v58 = vpop.f32.mrb[31].mxu0  ;;  %v707_v59 = vadd.f32 %v701_v40, %v653_v55 }
 0x2d3   :  { %v753_v60 = vpop.f32.mrb[32].mxu0 }
 0x2d4   :  { %v759_v62 = vadd.f32 %v753_v60, %v707_v59  ;;  %v1307_v63 = vpop.f32.mrb[33].mxu0 }
 0x2d5   :  { %v756_v0 = vpop.f32.mrb[34].mxu0 }
 0x2d6   :  { %v765_v1 = vadd.f32 %v1155_v61, %v759_v62  ;;  %v1308_v2 = vpop.f32.mrb[35].mxu0 }
 0x2d8   :  { %v766_v3 = vmax.f32 %v765_v1, 0.0 }
 0x2da   :  { %v767_v4 = vpack.c.bf16 %v766_v3, %v766_v3 }
 0x2dc   :  { %1314 = vmatmul.mubr.msk.bf16.vlgmr.msra.gmra.mrb[28].mxu1 %vm784_vm7, %v767_v4 }
 0x2dd   :  { %1325 = vmatprep.mubr.msk.bf16.mxu1 %vm1406_vm3, %v1405_v10 }
 0x3af   :  { %v822_v5 = vpop.f32.mrb[28].mxu1 }
 0x3b0   :  { %v828_v6 = vpack.c.bf16 %v822_v5, %v822_v5  ;;  %v1315_v7 = vpop.f32.mrb[29].mxu1 }
 0x3b1   :  { %v825_v8 = vpop.f32.mrb[30].mxu1 }
 0x3b2   :  { %979 = vrot.lane.b32.xlu1 %v828_v6, %s1407_s4  ;;  %832 = vrot.lane.b32.xlu0 %v828_v6, %s1408_s5  ;;  %v1316_v9 = vpop.f32.mrb[31].mxu1  ;;  %v886_v11 = vsel %vm838_vm8, %v828_v6, 0 }
 0x3b3   :  { %1324 = vmatpush3.bf16.msra.mxu1 %v886_v11 }
 0x3b4   :  { %1335 = vmatprep.subr.bf16.mxu1 %v1405_v10 }
 0x3b6   :  { %929 = vrot.lane.b32.xlu0 %v828_v6, %s1409_s8  ;;  %1326 = vmatmul.mubr.msk.bf16.vlgmr.msra.gmra.mrb[32].mxu1 %vm834_vm9, %v829_v12 }
 0x3b7   :  { %1337 = vmatprep.mubr.msk.bf16.mxu1 %vm1406_vm3, %v1405_v10 }
 0x424   :  { %v980_v13 = vpop.permute.xlu1 %979  ;;  %v833_v14 = vpop.permute.xlu0 %832 }
 0x425   :  { %v985_v15 = vsel %vm838_vm8, %v980_v13, 0  ;;  %v840_v16 = vsel %vm838_vm8, %v833_v14, 0 }
 0x426   :  { %1318 = vmatpush3.bf16.msra.mxu0 %v840_v16  ;;  %1336 = vmatpush3.bf16.msra.mxu1 %v985_v15 }
 0x427   :  { %1329 = vmatprep.subr.bf16.mxu0 %v1405_v10 }
 0x428   :  { %v930_v19 = vpop.permute.xlu0 %929 }
 0x429   :  { %v935_v20 = vsel %vm838_vm8, %v930_v19, 0  ;;  %1320 = vmatmul.mubr.msk.bf16.vlgmr.msra.gmra.mrb[36].mxu0 %vm834_vm9, %v830_v17  ;;  %1338 = vmatmul.mubr.msk.bf16.vlgmr.msra.gmra.mrb[36].mxu1 %vm834_vm9, %v978_v18 }
 0x42a   :  { %1330 = vmatpush3.bf16.msra.mxu0 %v935_v20  ;;  %1331 = vmatprep.mubr.msk.bf16.mxu0 %vm1406_vm3, %v1405_v10 }
 0x42b   :  { %1341 = vmatprep.subr.bf16.mxu0 %v1405_v10 }
 0x431   :  { %1332 = vmatmul.mubr.msk.bf16.vlgmr.msra.gmra.mrb[40].mxu0 %vm834_vm9, %v928_v21 }
 0x432   :  { %1345 = vmatprep.mubr.msk.bf16.mxu0 %vm1406_vm3, %v1405_v10  ;;  %1342 = vmatpush3.bf16.msra.mxu0 %v1378_v22 }
 0x433   :  { %1343 = vmatprep.subr.bf16.mxu0 %v1405_v10 }
 0x436   :  { %1344 = vmatpush3.bf16.msra.mxu0 %v1379_v25 }
 0x489   :  { %v922_v23 = vpop.f32.mrb[32].mxu1 }
 0x48a   :  { %v1327_v24 = vpop.f32.mrb[33].mxu1 }
 0x48b   :  { %v925_v26 = vpop.f32.mrb[34].mxu1 }
 0x48c   :  { %v1328_v27 = vpop.f32.mrb[35].mxu1 }
 0x4fc   :  { %v876_v28 = vpop.f32.mrb[36].mxu0  ;;  %v1021_v29 = vpop.f32.mrb[36].mxu1 }
 0x4fd   :  { %v1321_v30 = vpop.f32.mrb[37].mxu0  ;;  %v923_v31 = vadd.f32 %v922_v23, %v876_v28  ;;  %v1339_v32 = vpop.f32.mrb[37].mxu1 }
 0x4fe   :  { %v879_v33 = vpop.f32.mrb[38].mxu0  ;;  %v1024_v34 = vpop.f32.mrb[38].mxu1 }
 0x4ff   :  { %v1322_v35 = vpop.f32.mrb[39].mxu0  ;;  %v1340_v36 = vpop.f32.mrb[39].mxu1 }
 0x504   :  { %v971_v37 = vpop.f32.mrb[40].mxu0 }
 0x505   :  { %v977_v38 = vadd.f32 %v971_v37, %v923_v31  ;;  %v1333_v10 = vpop.f32.mrb[41].mxu0 }
 0x506   :  { %v974_v40 = vpop.f32.mrb[42].mxu0 }
 0x507   :  { %v1027_v41 = vadd.f32 %v1021_v29, %v977_v38  ;;  %v1334_v42 = vpop.f32.mrb[43].mxu0 }
 0x509   :  { %v1033_v43 = vadd.f32 %v1163_v39, %v1027_v41 }
 0x50b   :  { %v1034_v44 = vmax.f32 %v1033_v43, 0.0 }
 0x50d   :  { %v1035_v45 = vpack.c.bf16 %v1034_v44, %v1034_v44 }
 0x50f   :  { %1346 = vmatmul.mubr.msk.bf16.vlgmr.msra.gmra.mrb[44].mxu0 %vm784_vm7, %v1035_v45 }
 0x5e2   :  { %v1094_v47 = vpop.f32.mrb[44].mxu0 }
 0x5e3   :  { %v1095_v48 = vadd.f32 %v1164_v46, %v1094_v47  ;;  %v1347_v49 = vpop.f32.mrb[45].mxu0 }
 0x5e4   :  { %v1097_v50 = vpop.f32.mrb[46].mxu0 }
 0x5e5   :  { %v1348_v51 = vpop.f32.mrb[47].mxu0  ;;  %1101 = vst.msk [vmem:[#allocation2] sm:$0x3] %vm1100_vm10, %v1095_v48 }
 0x5e6   :  { %1391 = shalt.err (!%p1388_p4)
}
 0x5e7   :  { %s1392_s2 = scalar_lea.hbm %s1622_s3, 32 }
 0x5e8   :  { %p1393_p5 = scmp.ne.s32.totalorder %s1622_s3, %s1392_s2  ;;  %p1396_p6 = scmp.lt.u32.totalorder %s1392_s2, %s1622_s3 }
 0x5ea   :  { %p1398_p7 = pnand %p1396_p6, %p1393_p5 }
 0x5ec   :  { %1401 = shalt.err (!%p1398_p7)
}
 0x5ed   :  { %1111 = dma.vmem_to_hbm [thread:$0]  %s1109_s23, 32, %s1622_s3, [#allocation3]  }
 0x5ee   :  { %1402 = dma.done.wait [#allocation3], 32  }
 0x5ef   :  { %1403 = vsyncadd [#allocation3], 4294967264 }
 0x5f0   :  { %1115 = vsyncpa [#allocation3], 1 }

</bundles_post_ra>
